<compile_context>
chip_gen: v7x
topology: tpu7x:2x2x1
jax: 0.10.0
libtpu: 0.0.40
codegen_flags: <defaults>
</compile_context>

<pallas_src>
import jax
import jax.numpy as jnp
from jax.experimental import pallas as pl
from jax.experimental.pallas import tpu as pltpu

IN_FEATURES = 1024
OUT_FEATURES = 1
DEFAULT_BLOCK_B = 2048          # 8 MiB f32 x-tile; ~18-19 MiB live with double-buffering.
VMEM_LIMIT_BYTES = 40 * 1024 * 1024   # legal on v5e/v6e (128 MiB phys) and v7x (64 MiB phys).


def _linear_kernel(x_ref, w_ref, b_ref, o_ref):
    # x_ref: (TB, 1024) VMEM     w_ref: (1, 1024) f32 VMEM (resident across grid)
    # b_ref: (1,)       SMEM f32  o_ref: (TB, 1)   VMEM
    x = x_ref[...].astype(jnp.float32)                    # no-op for f32 inputs
    prod = x * w_ref[...]                                 # VPU, row-broadcast of w
    acc = jnp.sum(prod, axis=-1, keepdims=True)           # XLU lane reduce, f32 accum
    o_ref[...] = (acc + b_ref[0]).astype(o_ref.dtype)     # scalar bias from SMEM


def disease_classifier_forward(x, weight, bias, *, block_b=DEFAULT_BLOCK_B):
    """Forward of nn.Linear(1024, 1).

    x:      (B, 1024)   f32 or bf16
    weight: (1, 1024)   -- PyTorch (out_features, in_features) layout
    bias:   (1,)
    returns (B, 1) in x.dtype
    """
    B = x.shape[0]
    w_row = weight.reshape(1, IN_FEATURES).astype(jnp.float32)   # tiny, keep f32 resident
    b_vec = bias.reshape(OUT_FEATURES).astype(jnp.float32)

    # Single full-extent block for small batches (any B is a legal full-dim block);
    # otherwise fixed TB tiles with a Pallas-masked ragged last block (no pad/slice).
    tb = B if B <= block_b else block_b
    grid = (pl.cdiv(B, tb),)
    itemsize = jnp.dtype(x.dtype).itemsize

    return pl.pallas_call(
        _linear_kernel,
        out_shape=jax.ShapeDtypeStruct((B, OUT_FEATURES), x.dtype),
        grid_spec=pltpu.PrefetchScalarGridSpec(
            num_scalar_prefetch=0,
            grid=grid,
            in_specs=[
                pl.BlockSpec((tb, IN_FEATURES), lambda i: (i, 0)),
                pl.BlockSpec((1, IN_FEATURES), lambda i: (0, 0)),
                pl.BlockSpec(memory_space=pltpu.MemorySpace.SMEM),
            ],
            out_specs=pl.BlockSpec((tb, OUT_FEATURES), lambda i: (i, 0)),
        ),
        compiler_params=pltpu.CompilerParams(
            dimension_semantics=("parallel",),
            vmem_limit_bytes=VMEM_LIMIT_BYTES,
        ),
        cost_estimate=pl.CostEstimate(
            flops=2 * B * IN_FEATURES,
            transcendentals=0,
            bytes_accessed=(B * IN_FEATURES * itemsize      # x read
                            + IN_FEATURES * 4               # weight (f32)
                            + 4                             # bias
                            + B * OUT_FEATURES * itemsize), # output write
        ),
    )(x, w_row, b_vec)


if __name__ == "__main__":
    key = jax.random.PRNGKey(0)
    kx, kw, kb, kx2, kx3 = jax.random.split(key, 5)

    # nn.Linear default init: U(-1/sqrt(fan_in), 1/sqrt(fan_in)), PyTorch layout.
    bound = 1.0 / (IN_FEATURES ** 0.5)
    weight = jax.random.uniform(
        kw, (OUT_FEATURES, IN_FEATURES), jnp.float32, -bound, bound
    )
    bias = jax.random.uniform(kb, (OUT_FEATURES,), jnp.float32, -bound, bound)

    def ref_forward(x):
        return (jnp.dot(x.astype(jnp.float32), weight.T,
                        precision=jax.lax.Precision.HIGHEST) + bias)

    # Small batch (the module's typical use; single full-extent block path).
    B1 = 2
    x1 = jax.random.normal(kx, (B1, IN_FEATURES), jnp.float32)
    out1 = jax.block_until_ready(disease_classifier_forward(x1, weight, bias))
    assert out1.shape == (B1, OUT_FEATURES)
    assert jnp.allclose(out1, ref_forward(x1), atol=2e-4, rtol=2e-4)

    # Non-multiple-of-TB batch exercises the tiled path with a masked ragged
    # last block (no host pad, no output slice).
    B2 = 2500
    x2 = jax.random.normal(kx2, (B2, IN_FEATURES), jnp.float32)
    out2 = jax.block_until_ready(disease_classifier_forward(x2, weight, bias))
    assert out2.shape == (B2, OUT_FEATURES)
    assert jnp.allclose(out2, ref_forward(x2), atol=2e-4, rtol=2e-4)

    # bf16 activations: halved x DMA bytes, reduction still accumulated in f32.
    B3 = 8
    x3 = jax.random.normal(kx3, (B3, IN_FEATURES), jnp.float32).astype(jnp.bfloat16)
    out3 = jax.block_until_ready(disease_classifier_forward(x3, weight, bias))
    assert out3.shape == (B3, OUT_FEATURES)
    assert jnp.allclose(out3.astype(jnp.float32), ref_forward(x3), atol=2e-2, rtol=2e-2)

    print("KERNEL_OK")
</pallas_src>

<mosaic_0001>
module attributes {stable_mosaic.version = 11 : i64} {
  func.func @_linear_kernel(%arg0: i32, %arg1: memref<2x1024xf32, #tpu.memory_space<vmem>>, %arg2: memref<1x1024xf32, #tpu.memory_space<vmem>>, %arg3: memref<1xf32, #tpu.memory_space<smem>>, %arg4: memref<2x1xf32, #tpu.memory_space<vmem>>) attributes {dimension_semantics = [#tpu.dimension_semantics<parallel>], iteration_bounds = array<i64: 1>, scalar_prefetch = 0 : i64, scratch_operands = 0 : i64, tpu.core_type = #tpu.core_type<tc>, window_params = [{transform_indices = @transform_0, window_bounds = array<i64: 2, 1024>}, {pipeline_mode = #tpu.pipeline_mode<synchronous>, transform_indices = @transform_1, window_bounds = array<i64: 1, 1024>}, {transform_indices = @transform_2, window_bounds = array<i64: 1>}, {transform_indices = @transform_3, window_bounds = array<i64: 2, 1>}]} {
    %c0 = arith.constant 0 : index
    %c0_0 = arith.constant 0 : index
    %0 = vector.load %arg1[%c0, %c0_0] : memref<2x1024xf32, #tpu.memory_space<vmem>>, vector<2x1024xf32>
    %c0_1 = arith.constant 0 : index
    %c0_2 = arith.constant 0 : index
    %1 = vector.load %arg2[%c0_1, %c0_2] : memref<1x1024xf32, #tpu.memory_space<vmem>>, vector<1x1024xf32>
    %2 = vector.broadcast %1 : vector<1x1024xf32> to vector<2x1024xf32>
    %3 = arith.mulf %0, %2 : vector<2x1024xf32>
    %cst = arith.constant dense<0.000000e+00> : vector<2xf32>
    %4 = vector.multi_reduction <add>, %3, %cst [1] : vector<2x1024xf32> to vector<2xf32>
    %5 = vector.shape_cast %4 : vector<2xf32> to vector<2x1xf32>
    %c0_3 = arith.constant 0 : index
    %6 = memref.load %arg3[%c0_3] : memref<1xf32, #tpu.memory_space<smem>>
    %7 = vector.broadcast %6 : f32 to vector<2x1xf32>
    %8 = arith.addf %5, %7 : vector<2x1xf32>
    %c0_4 = arith.constant 0 : index
    %c0_5 = arith.constant 0 : index
    %9 = vector.load %arg4[%c0_4, %c0_5] : memref<2x1xf32, #tpu.memory_space<vmem>>, vector<2x1xf32>
    tpu.vector_store %arg4[%c0_4, %c0_5], %8 {strides = array<i32>} : memref<2x1xf32, #tpu.memory_space<vmem>>, vector<2x1xf32>,
    return
  }
  func.func @transform_0(%arg0: i32) -> (i32, i32) {
    %c0_i32 = arith.constant 0 : i32
    %c0_i32_0 = arith.constant 0 : i32
    return %arg0, %c0_i32 : i32, i32
  }
  func.func @transform_1(%arg0: i32) -> (i32, i32) {
    %c0_i32 = arith.constant 0 : i32
    %c0_i32_0 = arith.constant 0 : i32
    %c0_i32_1 = arith.constant 0 : i32
    return %c0_i32, %c0_i32_0 : i32, i32
  }
  func.func @transform_2(%arg0: i32) -> i32 {
    %c0_i32 = arith.constant 0 : i32
    %c0_i32_0 = arith.constant 0 : i32
    return %c0_i32 : i32
  }
  func.func @transform_3(%arg0: i32) -> (i32, i32) {
    %c0_i32 = arith.constant 0 : i32
    %c0_i32_0 = arith.constant 0 : i32
    return %arg0, %c0_i32 : i32, i32
  }
}

</mosaic_0001>

<bundles_post_ra>
// kernel: tpu_custom_call.1
= control target key start
LH: loop header
LB: loop body
LE: loop exit
PB: predicated region body
PF: predicated region fallthrough
CT: control target
= control target key end

     0   :  { %9 = vsyncpa [#allocation4], 0  ;;  %s298_s0 = inlined_call_operand.hbm [shape: f32[2,1024], index: 0, kind: input, shape index: {}]   ;;  %s299_s1 = inlined_call_operand.hbm [shape: f32[1,1024], index: 1, kind: input, shape index: {}]   ;;  %s300_s2 = inlined_call_operand.<no memory space> [shape: f32[1], index: 2, kind: input, shape index: {}]   ;;  %s301_s3 = inlined_call_operand.vmem [shape: f32[2,1], index: 3, kind: output, shape index: {}]  }
   0x1   :  { %10 = vsyncpa [#allocation6], 0  ;;  %s237_s12 = smov [#allocation3]   ;;  %s238_s14 = smov [#allocation5]  }
   0x2   :  { %s17_s13 = sshll.u32 %s237_s12, 4  ;;  %s27_s15 = sshll.u32 %s238_s14, 4  ;;  %s18_s13 = int_to_ptr.vmem [resolvable:$true] %s17_s13  ;;  %s28_s15 = int_to_ptr.vmem [resolvable:$true] %s27_s15 }
   0x3   :  { %s189_s18 = scalar_lea.hbm %s298_s0, 256 }
   0x4   :  { %p190_p0 = scmp.ne.s32.totalorder %s298_s0, %s189_s18  ;;  %p193_p1 = scmp.lt.u32.totalorder %s189_s18, %s298_s0 }
   0x6   :  { %p195_p2 = pnand %p193_p1, %p190_p0 }
   0x8   :  { %198 = shalt.err (!%p195_p2)
}
   0x9   :  { %s199_s23 = scalar_lea.vmem %s18_s13, 256  ;;  %p204_p4 = scmp.lt.s32.totalorder %s18_s13, %s18_s13 }
   0xa   :  { %p200_p3 = scmp.ne.s32.totalorder %s18_s13, %s199_s23  ;;  %p205_p5 = scmp.lt.s32.totalorder %s199_s23, %s199_s23 }
   0xc   :  { %p206_p6 = por %p205_p5, %p204_p4 }
   0xe   :  { %p207_p7 = pnand %p206_p6, %p200_p3 }
  0x10   :  { %210 = shalt.err (!%p207_p7)
}
  0x11   :  { %20 = dma.hbm_to_vmem [thread:$0]  %s298_s0, 256, %s18_s13, [#allocation4]  }
  0x12   :  { %s211_s28 = scalar_lea.hbm %s299_s1, 128 }
  0x13   :  { %p212_p8 = scmp.ne.s32.totalorder %s299_s1, %s211_s28  ;;  %p215_p9 = scmp.lt.u32.totalorder %s211_s28, %s299_s1 }
  0x15   :  { %p217_p10 = pnand %p215_p9, %p212_p8 }
  0x17   :  { %220 = shalt.err (!%p217_p10)
}
  0x18   :  { %s221_s6 = scalar_lea.vmem %s28_s15, 128  ;;  %p226_p12 = scmp.lt.s32.totalorder %s28_s15, %s28_s15 }
  0x19   :  { %p222_p11 = scmp.ne.s32.totalorder %s28_s15, %s221_s6  ;;  %p227_p13 = scmp.lt.s32.totalorder %s221_s6, %s221_s6 }
  0x1b   :  { %p228_p0 = por %p227_p13, %p226_p12 }
  0x1d   :  { %p229_p1 = pnand %p228_p0, %p222_p11 }
  0x1f   :  { %232 = shalt.err (!%p229_p1)
}
  0x20   :  { %30 = dma.hbm_to_vmem [thread:$0]  %s299_s1, 128, %s28_s15, [#allocation6]  }
  0x21   :  { %233 = dma.done.wait [#allocation4], 256  }
  0x22   :  { %234 = vsyncadd [#allocation4], 4294967040 }
  0x23   :  { %235 = dma.done.wait [#allocation6], 128  }
  0x24   :  { %236 = vsyncadd [#allocation6], 4294967168  ;;  %v43_v0 = vlaneseq  ;;  %v239_v1 = vmov 1983009808   ;;  %v41_v13 = vld [vmem:[#allocation5] sm:$0xff]  ;;  %v39_v29 = vld [vmem:[#allocation3] sm:$0xff]  ;;  %v176_v62 = vstv %s300_s2 }
  0x25   :  { %v78_v2 = vunpack.c.l.s4 %v239_v1  ;;  %v40_v32 = vld [vmem:[#allocation3 + $0x8] sm:$0xff]  ;;  %vm157_vm0 = vcmask 1041408   ;;  %vm178_vm1 = vcmask 1024  }
  0x26   :  { %v44_v3 = vshrl.u32 %v43_v0, 7 }
  0x27   :  { %v79_v4 = vunpack.c.0.s8 %v78_v2 }
  0x28   :  { %v45_v5 = vsub.s32 0, %v44_v3  ;;  %v49_v6 = vsub.s32 1, %v44_v3  ;;  %v53_v7 = vsub.s32 2, %v44_v3  ;;  %v57_v8 = vsub.s32 3, %v44_v3 }
  0x29   :  { %v61_v9 = vsub.s32 4, %v44_v3  ;;  %v65_v10 = vsub.s32 5, %v44_v3  ;;  %v69_v11 = vsub.s32 6, %v44_v3  ;;  %v73_v12 = vsub.s32 7, %v44_v3 }
  0x2a   :  { %v82_v14 = vsub.s32 %v79_v4, %v44_v3  ;;  %v46_v15 = vrot.slane %v41_v13, %v45_v5  ;;  %v50_v16 = vrot.slane %v41_v13, %v49_v6  ;;  %v54_v17 = vrot.slane %v41_v13, %v53_v7 }
  0x2b   :  { %v58_v18 = vrot.slane %v41_v13, %v57_v8  ;;  %v62_v19 = vrot.slane %v41_v13, %v61_v9  ;;  %v66_v20 = vrot.slane %v41_v13, %v65_v10  ;;  %v70_v21 = vrot.slane %v41_v13, %v69_v11 }
  0x2c   :  { %v74_v22 = vrot.slane %v41_v13, %v73_v12  ;;  %v75_v23 = vcombine.low %v46_v15, %v50_v16 }
  0x2d   :  { %v76_v24 = vcombine.low %v54_v17, %v58_v18  ;;  %v92_v25 = vcombine.low %v62_v19, %v66_v20 }
  0x2e   :  { %v93_v26 = vcombine.low %v70_v21, %v74_v22  ;;  %v83_v27 = vrot.slane %v75_v23, %v82_v14 }
  0x2f   :  { %v90_v28 = vrot.slane %v76_v24, %v82_v14  ;;  %v100_v30 = vrot.slane %v92_v25, %v82_v14 }
  0x30   :  { %v107_v31 = vrot.slane %v93_v26, %v82_v14 }
  0x31   :  { %v91_v33 = vcombine.low %v83_v27, %v90_v28 }
  0x32   :  { %v108_v34 = vcombine.low %v100_v30, %v107_v31 }
  0x33   :  { %v111_v35 = vmul.f32 %v91_v33, %v39_v29 }
  0x34   :  { %v112_v36 = vmul.f32 %v108_v34, %v40_v32 }
  0x35   :  { %v115_v37 = vcombine.high %v111_v35, %v111_v35  ;;  %v122_v38 = vrot.slane %v111_v35, %v82_v14 }
  0x36   :  { %v132_v39 = vcombine.high %v112_v36, %v112_v36  ;;  %v139_v42 = vrot.slane %v112_v36, %v82_v14 }
  0x37   :  { %v129_v40 = vrot.slane %v115_v37, %v82_v14  ;;  %v130_v41 = vcombine.high %v122_v38, %v122_v38  ;;  %v158_v43 = vsel %vm157_vm0, %v122_v38, 0.0 }
  0x38   :  { %v146_v48 = vrot.slane %v132_v39, %v82_v14  ;;  %v147_v49 = vcombine.high %v139_v42, %v139_v42  ;;  %v165_v52 = vsel %vm157_vm0, %v139_v42, 0.0 }
  0x39   :  { %v131_v44 = vcombine.high %v129_v40, %v129_v40  ;;  %v159_v45 = vsel %vm157_vm0, %v130_v41, 0.0  ;;  %v161_v46 = vsel %vm157_vm0, %v129_v40, 0.0 }
  0x3a   :  { %v160_v47 = vadd.f32 %v159_v45, %v158_v43  ;;  %v148_v54 = vcombine.high %v146_v48, %v146_v48  ;;  %v167_v55 = vsel %vm157_vm0, %v147_v49, 0.0  ;;  %v169_v57 = vsel %vm157_vm0, %v146_v48, 0.0 }
  0x3b   :  { %v163_v50 = vsel %vm157_vm0, %v131_v44, 0.0 }
  0x3c   :  { %v162_v51 = vadd.f32 %v161_v46, %v160_v47  ;;  %v171_v59 = vsel %vm157_vm0, %v148_v54, 0.0 }
  0x3e   :  { %v164_v53 = vadd.f32 %v163_v50, %v162_v51 }
  0x40   :  { %v166_v56 = vadd.f32 %v165_v52, %v164_v53 }
  0x42   :  { %v168_v58 = vadd.f32 %v167_v55, %v166_v56 }
  0x44   :  { %v170_v60 = vadd.f32 %v169_v57, %v168_v58 }
  0x46   :  { %v172_v61 = vadd.f32 %v171_v59, %v170_v60 }
  0x48   :  { %173 = vadd.xlane.f32.xlu0 %v172_v61 }
  0xd5   :  { %v174_v63 = vpop.xlane.xlu0 %173 }
  0xd6   :  { %v177_v0 = vadd.f32 %v176_v62, %v174_v63 }
  0xd8   :  { %179 = vst.msk [vmem:[%s301_s3] sm:$0x3] %vm178_vm1, %v177_v0 }
  0xd9   :  { %184 = vsyncpa [#allocation4], 1 }
  0xda   :  { %185 = vsyncpa [#allocation6], 1 }

</bundles_post_ra>
